<compile_context>
chip_gen: v5e
topology: v5e:2x2
jax: 0.10.0
libtpu: 0.0.40
codegen_flags: <defaults>
</compile_context>

<pallas_src>
import functools

import jax
import jax.numpy as jnp
from jax.experimental import pallas as pl
from jax.experimental.pallas import tpu as pltpu


def make_interp_matrix(in_size: int, out_size: int) -> jnp.ndarray:
    """Row-stochastic matrix M (out_size, in_size) s.t. y = M @ x reproduces
    torch.nn.functional.interpolate(mode='bilinear', align_corners=False)
    along one axis."""
    scale = in_size / out_size
    dst = jnp.arange(out_size, dtype=jnp.float32)
    src = (dst + 0.5) * scale - 0.5
    src = jnp.maximum(src, 0.0)                      # PyTorch clamps negative src to 0
    i0 = jnp.floor(src).astype(jnp.int32)
    i0 = jnp.minimum(i0, in_size - 1)
    i1 = jnp.minimum(i0 + 1, in_size - 1)
    w1 = jnp.clip(src - i0.astype(jnp.float32), 0.0, 1.0)
    w0 = 1.0 - w1
    rows = jnp.arange(out_size)
    m = jnp.zeros((out_size, in_size), dtype=jnp.float32)
    m = m.at[rows, i0].add(w0)
    m = m.at[rows, i1].add(w1)
    return m


def _interp_kernel(a_ref, bt_ref, x_ref, o_ref, *, planes):
    # a_ref : (H_out_pad, H_in_pad)   row-interpolation weights   (single-buffered)
    # bt_ref: (W_in, W_out)           column-interpolation weights (single-buffered)
    # x_ref : (P, H_in_pad, W_in)     P planes per grid step
    # o_ref : (P, H_out_pad, W_out)
    a = a_ref[...]
    bt = bt_ref[...]
    # Short static unroll over planes (P is capped); each plane is two clean
    # 2-D MXU matmuls with f32 accumulation — no block-diagonal waste.
    for p in range(planes):
        tmp = jnp.dot(a, x_ref[p], preferred_element_type=jnp.float32)
        tmp = tmp.astype(x_ref.dtype)        # keep fast MXU path for bf16 inputs
        o_ref[p] = jnp.dot(tmp, bt,
                           preferred_element_type=jnp.float32).astype(o_ref.dtype)


def _round_up(x: int, m: int) -> int:
    return -(-x // m) * m


def _vmem_capacity_bytes() -> int:
    """Physical VMEM of the current chip generation (fallback: 64 MiB = v7x)."""
    try:
        info = pltpu.get_tpu_info()
        cap = int(getattr(info, "vmem_capacity_bytes", 0))
        if cap > 0:
            return cap
    except Exception:
        pass
    return 64 * 1024 * 1024


_MAX_PLANES_PER_STEP = 32   # bounds the static kernel unroll / compile time


def _choose_plane_block(nc, h_in, w_in, h_out, w_out, itemsize, budget):
    """Pick P = planes per grid step and the grid size g; return VMEM estimate."""

    def vmem_bytes(p):
        blk_in = p * h_in * w_in * itemsize
        blk_out = p * h_out * w_out * itemsize
        weights = (h_out * h_in + w_in * w_out) * itemsize   # single-buffered consts
        tmp_b = h_out * (w_in + w_out) * 4                   # f32 per-plane intermediates
        return 2 * (blk_in + blk_out) + weights + tmp_b      # x/out are double-buffered

    p = max(1, min(nc, _MAX_PLANES_PER_STEP))
    while p > 1 and vmem_bytes(p) > budget:
        p -= 1
    g = -(-nc // p)
    if nc > 1:
        g = max(g, 2)            # keep both v7x TensorCores busy
        if g % 2:
            g += 1               # even step count for 2-TC grid sharding
        p = -(-nc // g)
    return p, g, vmem_bytes(p)


@functools.partial(jax.jit, static_argnames=("scale_factor", "mode"))
def interpolate(x: jnp.ndarray, scale_factor: int = 2, mode: str = "bilinear"):
    """Pallas equivalent of Interpolate(scale_factor, mode).forward(x).

    x: NCHW tensor. Returns NCHW tensor of shape (N, C, H*sf, W*sf).
    """
    if mode != "bilinear":
        # TODO(synk): only 'bilinear' (the mode MiDaS uses) is implemented.
        raise NotImplementedError(f"mode={mode!r} not supported")

    n, c, h_in, w_in = x.shape
    h_out = int(h_in * scale_factor)
    w_out = int(w_in * scale_factor)
    nc = n * c
    itemsize = jnp.dtype(x.dtype).itemsize

    # Generation-aware VMEM sizing: ~5/8 of physical VMEM as block budget.
    cap = _vmem_capacity_bytes()
    budget = max(24 << 20, (cap * 5) // 8)
    p_blk, g, vmem_need = _choose_plane_block(nc, h_in, w_in, h_out, w_out,
                                              itemsize, budget)
    nc_pad = g * p_blk

    # Sublane-align the H dims (8 rows for f32, 16 for bf16, 32 for int8).
    sub = {1: 32, 2: 16, 4: 8}.get(itemsize, 8)
    h_in_pad = _round_up(h_in, sub)
    h_out_pad = _round_up(h_out, sub)

    # Interpolation weights, cast to input dtype (exact for sf=2: 0.25/0.75).
    a = make_interp_matrix(h_in, h_out)                       # (H_out, H_in)
    a = jnp.pad(a, ((0, h_out_pad - h_out), (0, h_in_pad - h_in))).astype(x.dtype)
    bt = make_interp_matrix(w_in, w_out).T.astype(x.dtype)    # (W_in, W_out)

    # Layout plumbing is a pure reshape (+ zero-pad only when needed) — no
    # fold/unfold transposes, no extra HBM passes.
    x_planes = x.reshape(nc, h_in, w_in)
    if nc_pad != nc or h_in_pad != h_in:
        x_planes = jnp.pad(x_planes,
                           ((0, nc_pad - nc), (0, h_in_pad - h_in), (0, 0)))

    flops = 2 * nc_pad * h_out_pad * (h_in_pad * w_in + w_in * w_out)
    bytes_accessed = ((x_planes.size + nc_pad * h_out_pad * w_out) * itemsize
                      + (a.size + bt.size) * itemsize)

    vmem_limit = int(min(max(2 * vmem_need, 16 << 20), (cap * 7) // 8))

    kernel = functools.partial(_interp_kernel, planes=p_blk)

    out_planes = pl.pallas_call(
        kernel,
        out_shape=jax.ShapeDtypeStruct((nc_pad, h_out_pad, w_out), x.dtype),
        grid=(g,),
        in_specs=[
            # Constant index_map + single buffer: weights DMA'd once, kept resident.
            pl.BlockSpec((h_out_pad, h_in_pad), lambda i: (0, 0),
                         pipeline_mode=pl.Buffered(1)),
            pl.BlockSpec((w_in, w_out), lambda i: (0, 0),
                         pipeline_mode=pl.Buffered(1)),
            pl.BlockSpec((p_blk, h_in_pad, w_in), lambda i: (i, 0, 0)),
        ],
        out_specs=pl.BlockSpec((p_blk, h_out_pad, w_out), lambda i: (i, 0, 0)),
        compiler_params=pltpu.CompilerParams(
            dimension_semantics=("parallel",),
            vmem_limit_bytes=vmem_limit,
        ),
        cost_estimate=pl.CostEstimate(
            flops=int(flops),
            transcendentals=0,
            bytes_accessed=int(bytes_accessed),
        ),
    )(a, bt, x_planes)

    # Drop padding and restore NCHW (pure slice + reshape, no transpose).
    out = out_planes[:nc, :h_out, :].reshape(n, c, h_out, w_out)
    return out


def _reference(x, scale_factor=2):
    """Pure-JAX reference using the same separable-matmul formulation (f32)."""
    n, c, h_in, w_in = x.shape
    a = make_interp_matrix(h_in, int(h_in * scale_factor))
    b = make_interp_matrix(w_in, int(w_in * scale_factor))
    return jnp.einsum("oh,nchw,pw->ncop", a, x.astype(jnp.float32), b).astype(x.dtype)


if __name__ == "__main__":
    key = jax.random.PRNGKey(0)
    x = jax.random.normal(key, (2, 4, 16, 16), dtype=jnp.float32)

    out = interpolate(x, scale_factor=2, mode="bilinear")
    out = jax.block_until_ready(out)
    assert out.shape == (2, 4, 32, 32), out.shape

    ref = _reference(x, scale_factor=2)
    assert jnp.allclose(out, ref, atol=1e-5, rtol=1e-5), \
        float(jnp.max(jnp.abs(out - ref)))

    # bf16 path: weights 0.25/0.75 are exact in bf16; the row-interpolated
    # intermediate is rounded to bf16, so allow a few-ulp tolerance.
    xb = x.astype(jnp.bfloat16)
    outb = jax.block_until_ready(interpolate(xb, scale_factor=2, mode="bilinear"))
    refb = _reference(xb, scale_factor=2).astype(jnp.float32)
    assert outb.shape == (2, 4, 32, 32), outb.shape
    assert jnp.allclose(outb.astype(jnp.float32), refb, atol=5e-2, rtol=5e-2)

    print("KERNEL_OK")
</pallas_src>

<mosaic_0001>
module attributes {stable_mosaic.version = 11 : i64} {
  func.func @_interp_kernel(%arg0: i32, %arg1: memref<32x16xf32, #tpu.memory_space<vmem>>, %arg2: memref<16x32xf32, #tpu.memory_space<vmem>>, %arg3: memref<4x16x16xf32, #tpu.memory_space<vmem>>, %arg4: memref<4x32x32xf32, #tpu.memory_space<vmem>>) attributes {dimension_semantics = [#tpu.dimension_semantics<parallel>], iteration_bounds = array<i64: 2>, scalar_prefetch = 0 : i64, scratch_operands = 0 : i64, tpu.core_type = #tpu.core_type<tc>, window_params = [{pipeline_mode = #tpu.pipeline_mode<synchronous>, transform_indices = @transform_0, window_bounds = array<i64: 32, 16>}, {pipeline_mode = #tpu.pipeline_mode<synchronous>, transform_indices = @transform_1, window_bounds = array<i64: 16, 32>}, {transform_indices = @transform_2, window_bounds = array<i64: 4, 16, 16>}, {transform_indices = @transform_3, window_bounds = array<i64: 4, 32, 32>}]} {
    %c0 = arith.constant 0 : index
    %c0_0 = arith.constant 0 : index
    %0 = vector.load %arg1[%c0, %c0_0] : memref<32x16xf32, #tpu.memory_space<vmem>>, vector<32x16xf32>
    %c0_1 = arith.constant 0 : index
    %c0_2 = arith.constant 0 : index
    %1 = vector.load %arg2[%c0_1, %c0_2] : memref<16x32xf32, #tpu.memory_space<vmem>>, vector<16x32xf32>
    %c0_3 = arith.constant 0 : index
    %c0_4 = arith.constant 0 : index
    %c0_5 = arith.constant 0 : index
    %2 = vector.load %arg3[%c0_3, %c0_4, %c0_5] : memref<4x16x16xf32, #tpu.memory_space<vmem>>, vector<1x16x16xf32>
    %3 = vector.shape_cast %2 : vector<1x16x16xf32> to vector<16x16xf32>
    %cst = arith.constant dense<0.000000e+00> : vector<32x16xf32>
    %4 = tpu.matmul %0, %3, %cst {dimension_numbers = #tpu.dot_dimension_numbers<[1], [0], [0], [1], [0, 0, 1, 1], [], []>} : vector<32x16xf32>, vector<16x16xf32>, vector<32x16xf32> -> vector<32x16xf32>
    %cst_6 = arith.constant dense<0.000000e+00> : vector<32x32xf32>
    %5 = tpu.matmul %4, %1, %cst_6 {dimension_numbers = #tpu.dot_dimension_numbers<[1], [0], [0], [1], [0, 0, 1, 1], [], []>} : vector<32x16xf32>, vector<16x32xf32>, vector<32x32xf32> -> vector<32x32xf32>
    %c0_7 = arith.constant 0 : index
    %c0_8 = arith.constant 0 : index
    %c0_9 = arith.constant 0 : index
    %6 = vector.load %arg4[%c0_7, %c0_8, %c0_9] : memref<4x32x32xf32, #tpu.memory_space<vmem>>, vector<1x32x32xf32>
    %7 = vector.shape_cast %6 : vector<1x32x32xf32> to vector<32x32xf32>
    %8 = vector.shape_cast %5 : vector<32x32xf32> to vector<1x32x32xf32>
    tpu.vector_store %arg4[%c0_7, %c0_8, %c0_9], %8 {strides = array<i32>} : memref<4x32x32xf32, #tpu.memory_space<vmem>>, vector<1x32x32xf32>,
    %c1 = arith.constant 1 : index
    %c0_10 = arith.constant 0 : index
    %c0_11 = arith.constant 0 : index
    %9 = vector.load %arg3[%c1, %c0_10, %c0_11] : memref<4x16x16xf32, #tpu.memory_space<vmem>>, vector<1x16x16xf32>
    %10 = vector.shape_cast %9 : vector<1x16x16xf32> to vector<16x16xf32>
    %cst_12 = arith.constant dense<0.000000e+00> : vector<32x16xf32>
    %11 = tpu.matmul %0, %10, %cst_12 {dimension_numbers = #tpu.dot_dimension_numbers<[1], [0], [0], [1], [0, 0, 1, 1], [], []>} : vector<32x16xf32>, vector<16x16xf32>, vector<32x16xf32> -> vector<32x16xf32>
    %cst_13 = arith.constant dense<0.000000e+00> : vector<32x32xf32>
    %12 = tpu.matmul %11, %1, %cst_13 {dimension_numbers = #tpu.dot_dimension_numbers<[1], [0], [0], [1], [0, 0, 1, 1], [], []>} : vector<32x16xf32>, vector<16x32xf32>, vector<32x32xf32> -> vector<32x32xf32>
    %c1_14 = arith.constant 1 : index
    %c0_15 = arith.constant 0 : index
    %c0_16 = arith.constant 0 : index
    %13 = vector.load %arg4[%c1_14, %c0_15, %c0_16] : memref<4x32x32xf32, #tpu.memory_space<vmem>>, vector<1x32x32xf32>
    %14 = vector.shape_cast %13 : vector<1x32x32xf32> to vector<32x32xf32>
    %15 = vector.shape_cast %12 : vector<32x32xf32> to vector<1x32x32xf32>
    tpu.vector_store %arg4[%c1_14, %c0_15, %c0_16], %15 {strides = array<i32>} : memref<4x32x32xf32, #tpu.memory_space<vmem>>, vector<1x32x32xf32>,
    %c2 = arith.constant 2 : index
    %c0_17 = arith.constant 0 : index
    %c0_18 = arith.constant 0 : index
    %16 = vector.load %arg3[%c2, %c0_17, %c0_18] : memref<4x16x16xf32, #tpu.memory_space<vmem>>, vector<1x16x16xf32>
    %17 = vector.shape_cast %16 : vector<1x16x16xf32> to vector<16x16xf32>
    %cst_19 = arith.constant dense<0.000000e+00> : vector<32x16xf32>
    %18 = tpu.matmul %0, %17, %cst_19 {dimension_numbers = #tpu.dot_dimension_numbers<[1], [0], [0], [1], [0, 0, 1, 1], [], []>} : vector<32x16xf32>, vector<16x16xf32>, vector<32x16xf32> -> vector<32x16xf32>
    %cst_20 = arith.constant dense<0.000000e+00> : vector<32x32xf32>
    %19 = tpu.matmul %18, %1, %cst_20 {dimension_numbers = #tpu.dot_dimension_numbers<[1], [0], [0], [1], [0, 0, 1, 1], [], []>} : vector<32x16xf32>, vector<16x32xf32>, vector<32x32xf32> -> vector<32x32xf32>
    %c2_21 = arith.constant 2 : index
    %c0_22 = arith.constant 0 : index
    %c0_23 = arith.constant 0 : index
    %20 = vector.load %arg4[%c2_21, %c0_22, %c0_23] : memref<4x32x32xf32, #tpu.memory_space<vmem>>, vector<1x32x32xf32>
    %21 = vector.shape_cast %20 : vector<1x32x32xf32> to vector<32x32xf32>
    %22 = vector.shape_cast %19 : vector<32x32xf32> to vector<1x32x32xf32>
    tpu.vector_store %arg4[%c2_21, %c0_22, %c0_23], %22 {strides = array<i32>} : memref<4x32x32xf32, #tpu.memory_space<vmem>>, vector<1x32x32xf32>,
    %c3 = arith.constant 3 : index
    %c0_24 = arith.constant 0 : index
    %c0_25 = arith.constant 0 : index
    %23 = vector.load %arg3[%c3, %c0_24, %c0_25] : memref<4x16x16xf32, #tpu.memory_space<vmem>>, vector<1x16x16xf32>
    %24 = vector.shape_cast %23 : vector<1x16x16xf32> to vector<16x16xf32>
    %cst_26 = arith.constant dense<0.000000e+00> : vector<32x16xf32>
    %25 = tpu.matmul %0, %24, %cst_26 {dimension_numbers = #tpu.dot_dimension_numbers<[1], [0], [0], [1], [0, 0, 1, 1], [], []>} : vector<32x16xf32>, vector<16x16xf32>, vector<32x16xf32> -> vector<32x16xf32>
    %cst_27 = arith.constant dense<0.000000e+00> : vector<32x32xf32>
    %26 = tpu.matmul %25, %1, %cst_27 {dimension_numbers = #tpu.dot_dimension_numbers<[1], [0], [0], [1], [0, 0, 1, 1], [], []>} : vector<32x16xf32>, vector<16x32xf32>, vector<32x32xf32> -> vector<32x32xf32>
    %c3_28 = arith.constant 3 : index
    %c0_29 = arith.constant 0 : index
    %c0_30 = arith.constant 0 : index
    %27 = vector.load %arg4[%c3_28, %c0_29, %c0_30] : memref<4x32x32xf32, #tpu.memory_space<vmem>>, vector<1x32x32xf32>
    %28 = vector.shape_cast %27 : vector<1x32x32xf32> to vector<32x32xf32>
    %29 = vector.shape_cast %26 : vector<32x32xf32> to vector<1x32x32xf32>
    tpu.vector_store %arg4[%c3_28, %c0_29, %c0_30], %29 {strides = array<i32>} : memref<4x32x32xf32, #tpu.memory_space<vmem>>, vector<1x32x32xf32>,
    return
  }
  func.func @transform_0(%arg0: i32) -> (i32, i32) {
    %c0_i32 = arith.constant 0 : i32
    %c0_i32_0 = arith.constant 0 : i32
    %c0_i32_1 = arith.constant 0 : i32
    return %c0_i32, %c0_i32_0 : i32, i32
  }
  func.func @transform_1(%arg0: i32) -> (i32, i32) {
    %c0_i32 = arith.constant 0 : i32
    %c0_i32_0 = arith.constant 0 : i32
    %c0_i32_1 = arith.constant 0 : i32
    return %c0_i32, %c0_i32_0 : i32, i32
  }
  func.func @transform_2(%arg0: i32) -> (i32, i32, i32) {
    %c0_i32 = arith.constant 0 : i32
    %c0_i32_0 = arith.constant 0 : i32
    %c0_i32_1 = arith.constant 0 : i32
    return %arg0, %c0_i32, %c0_i32_0 : i32, i32, i32
  }
  func.func @transform_3(%arg0: i32) -> (i32, i32, i32) {
    %c0_i32 = arith.constant 0 : i32
    %c0_i32_0 = arith.constant 0 : i32
    %c0_i32_1 = arith.constant 0 : i32
    return %arg0, %c0_i32, %c0_i32_0 : i32, i32, i32
  }
}

</mosaic_0001>

<bundles_post_ra>
// kernel: interpolate.1
= control target key start
LH: loop header
LB: loop body
LE: loop exit
PB: predicated region body
PF: predicated region fallthrough
CT: control target
= control target key end

     0   :  { %8 = vsyncpa [#allocation3], 0  ;;  %s951_s0 = inlined_call_operand.vmem [shape: f32[32,16], index: 0, kind: input, shape index: {}]   ;;  %s952_s1 = inlined_call_operand.vmem [shape: f32[16,32], index: 1, kind: input, shape index: {}]   ;;  %s953_s2 = inlined_call_operand.vmem [shape: f32[8,16,16], index: 2, kind: input, shape index: {}]   ;;  %s954_s3 = inlined_call_operand.hbm [shape: f32[8,32,32], index: 3, kind: output, shape index: {}]  }
   0x1   :  { %10 = vsyncpa [#allocation3 + $0x1], 0  ;;  %s778_s12 = smov 0   ;;  %s780_s13 = smov 0  }
   0x2   :  { %s782_s14 = smov 0   ;;  %s784_s15 = smov 0  }
   0x3 LB: > { %s799_s16 = sadd.s32 4294967295, %s754_s15   ;;  %s584_s17 = sadd.s32 4294967294, %s754_s15   ;;  %s754_s15 = sphi %s784_s15, %s960_s15   ;;  %s750_s14 = sphi %s782_s14, %s959_s14   ;;  %s746_s13 = sphi %s780_s13, %s958_s13   ;;  %s742_s12 = sphi %s778_s12, %s957_s12  }
   0x4   : > { %s803_s18 = sadd.s32 1, %s754_s15   ;;  %s91_s19 = sadd.s32 1, %s750_s14 }
   0x5   : > { %s88_s20 = ssub.s32 %s754_s15, %s803_s18  ;;  %p101_p0 = scmp.ne.s32.totalorder %s750_s14, %s746_s13 }
   0x6   : > { %p89_p1 = scmp.eq.s32.totalorder %s88_s20, 0  ;;  %p102_p2 = scmp.eq.s32.totalorder %s799_s16, 1 }
   0x7   : > { %p107_p3 = scmp.ne.s32.totalorder %s746_s13, %s742_s12  ;;  %p108_p4 = scmp.eq.s32.totalorder %s584_s17, 1 }
   0x8   : > { %s814_s21 = scalar_select %p89_p1, %s750_s14, %s91_s19  }
   0x9   : > { %p816_p5 = por %p102_p2, %p101_p0  ;;  %p820_p6 = por %p108_p4, %p107_p3 }
   0xa   : > { %p587_p7 = scmp.ge.s32.totalorder %s754_s15, 1  ;;  %p142_p8 = scmp.lt.s32.totalorder %s754_s15, 3 }
   0xc   : > { %p143_p9 = pnand %p587_p7, %p142_p8 }
   0xd   : > { %s589_s24 = sshll.u32 (!%p143_p9), %s799_s16, 2  ;;  %s164_s20 = sand.u32 (!%p143_p9), 1, %s746_s13  }
   0xe   : > { %146 = sbr.rel (%p143_p9) target bundleno = 350 (0x15e), region = 32  ;;  %p168_p10 = scmp.lt.s32.totalorder (!%p143_p9), %s589_s24, 7 }
   0xf   : > { %s650_s26 = sshll.u32 (!%p143_p9), %s799_s16, 7  ;;  %s506_s5 = scalar_lea.sflag (!%p143_p9), [#allocation3], %s164_s20 }
  0x10   : > { %s518_s29 = scalar_lea.hbm (!%p143_p9), %s954_s3, %s650_s26  ;;  %s712_s9 = scalar_lea.hbm (!%p143_p9), %s954_s3, 256 }
  0x11   : > { %s521_s4 = sshll.u32 (!%p143_p9), %s518_s29, 4  ;;  %s522_s4 = int_to_ptr.hbm [resolvable:$true] %s521_s4 }
  0x12   : > { %s706_s16 = sshra.s32 (!%p143_p9), %s522_s4, 4  ;;  %s707_s16 = int_to_ptr.hbm [resolvable:$true] %s706_s16 }
  0x13   : > { %s962_s24 = smov (!%p168_p10, %s589_s24), 7  ;;  %v175_v2 = vld [vmem:[%s951_s0] sm:$0xff]  ;;  %vm183_vm0 = vcmask 130048   ;;  %v176_v9 = vld [vmem:[%s951_s0 + $0x8] sm:$0xff]  ;;  %v177_v10 = vld [vmem:[%s951_s0 + $0x10] sm:$0xff]  ;;  %vm266_vm1 = vcmask 261120   ;;  %p713_p0 = scmp.lt.s32.totalorder %s707_s16, %s954_s3 }
  0x14   : > { %s648_s25 = sshll.u32 %s962_s24, 4  ;;  %v178_v11 = vld [vmem:[%s951_s0 + $0x18] sm:$0xff]  ;;  %v180_v12 = vld [vmem:[%s952_s1 + $0x8] sm:$0xff]  ;;  %v179_v13 = vld [vmem:[%s952_s1] sm:$0xff]  ;;  %s588_s24 = sshll.u32 %s164_s20, 7 }
  0x15   : > { %s172_s28 = scalar_lea.vmem %s953_s2, %s648_s25  ;;  %329 = vmatpush.msra.mxu3 %v180_v12  ;;  %251 = vmatpush.msra.mxu1 %v180_v12  ;;  %s883_s25 = scalar_lea.vmem [#allocation2], %s588_s24 }
  0x16   : > { %v601_v0 = vld [vmem:[%s172_s28 + $0x18] sm:$0xff]  ;;  %v600_v1 = vld [vmem:[%s172_s28 + $0x10] sm:$0xff]  ;;  %v182_v3 = vld [vmem:[%s172_s28 + $0x8] sm:$0xff]  ;;  %s519_s30 = sshll.u32 %s883_s25, 4  ;;  %s708_s6 = scalar_lea.hbm %s707_s16, 128  ;;  %s520_s30 = int_to_ptr.vmem [resolvable:$true] %s519_s30 }
  0x17   : > { %288 = vmatpush.msra.mxu2 %v601_v0  ;;  %v181_v4 = vld [vmem:[%s172_s28] sm:$0xff]  ;;  %v629_v5 = vld [vmem:[%s172_s28 + $0x38] sm:$0xff]  ;;  %210 = vmatpush.msra.mxu0 %v182_v3  ;;  %v615_v6 = vld [vmem:[%s172_s28 + $0x28] sm:$0xff]  ;;  %p709_p11 = scmp.ne.s32.totalorder %s707_s16, %s708_s6  ;;  %p714_p1 = scmp.lt.s32.totalorder %s712_s9, %s708_s6 }
  0x18   : > { %v628_v7 = vld [vmem:[%s172_s28 + $0x30] sm:$0xff]  ;;  %v614_v8 = vld [vmem:[%s172_s28 + $0x20] sm:$0xff]  ;;  %330 = vmatpush.msra.mxu3 %v179_v13  ;;  %252 = vmatpush.msra.mxu1 %v179_v13 }
  0x19   : > { %289 = vmatpush.msra.mxu2 %v600_v1  ;;  %211 = vmatpush.msra.mxu0 %v181_v4  ;;  %p710_p12 = pnand %p709_p11, %p816_p5  ;;  %p715_p2 = por %p714_p1, %p713_p0 }
  0x1a   : > { %602 = vmatmul.msk.f32.vlgmr.msra.gmra.mxu2 %vm183_vm0, %v175_v2  ;;  %592 = vmatmul.msk.f32.vlgmr.msra.gmra.mxu0 %vm183_vm0, %v175_v2 }
  0x1b   : > { %444 = vmatpush.msrb.mxu2 %v629_v5  ;;  %366 = vmatpush.msrb.mxu0 %v615_v6  ;;  %p711_p13 = pneg %p710_p12 }
  0x1c   : > { %485 = vmatpush.msrb.mxu3 %v180_v12  ;;  %407 = vmatpush.msrb.mxu1 %v180_v12 }
  0x1d   : > { %445 = vmatpush.msrb.mxu2 %v628_v7  ;;  %367 = vmatpush.msrb.mxu0 %v614_v8  ;;  %p716_p3 = pnand %p715_p2, %p711_p13 }
  0x1e   : > { %486 = vmatpush.msrb.mxu3 %v179_v13  ;;  %408 = vmatpush.msrb.mxu1 %v179_v13 }
  0x22   : > { %603 = vmatmul.msk.f32.gmra.mxu2 %vm183_vm0, %v176_v9  ;;  %593 = vmatmul.msk.f32.gmra.mxu0 %vm183_vm0, %v176_v9 }
  0x2a   : > { %604 = vmatmul.msk.f32.gmra.mxu2 %vm183_vm0, %v177_v10  ;;  %594 = vmatmul.msk.f32.gmra.mxu0 %vm183_vm0, %v177_v10 }
  0x32   : > { %605 = vmatmul.msk.f32.gmra.mxu2 %vm183_vm0, %v178_v11  ;;  %595 = vmatmul.msk.f32.gmra.mxu0 %vm183_vm0, %v178_v11 }
  0x3a   : > { %630 = vmatmul.msk.f32.vlgmr.msrb.gmra.mxu2 %vm183_vm0, %v175_v2  ;;  %616 = vmatmul.msk.f32.vlgmr.msrb.gmra.mxu0 %vm183_vm0, %v175_v2 }
  0x42   : > { %631 = vmatmul.msk.f32.gmra.mxu2 %vm183_vm0, %v176_v9  ;;  %617 = vmatmul.msk.f32.gmra.mxu0 %vm183_vm0, %v176_v9 }
  0x4a   : > { %632 = vmatmul.msk.f32.gmra.mxu2 %vm183_vm0, %v177_v10  ;;  %618 = vmatmul.msk.f32.gmra.mxu0 %vm183_vm0, %v177_v10 }
  0x52   : > { %633 = vmatmul.msk.f32.gmra.mxu2 %vm183_vm0, %v178_v11  ;;  %619 = vmatmul.msk.f32.gmra.mxu0 %vm183_vm0, %v178_v11 }
  0x97   : > { %v213_v14 = vpop.f32.mrf.mxu0 }
  0x98   : > { %596 = vmatmul.msk.f32.vlgmr.msra.gmra.mxu1 %vm183_vm0, %v213_v14 }
  0x9d   : > { %v291_v15 = vpop.f32.mrf.mxu2 }
  0x9e   : > { %606 = vmatmul.msk.f32.vlgmr.msra.gmra.mxu3 %vm183_vm0, %v291_v15 }
  0x9f   : > { %v216_v16 = vpop.f32.mrf.mxu0 }
  0xa0   : > { %597 = vmatmul.msk.f32.gmra.mxu1 %vm183_vm0, %v216_v16 }
  0xa5   : > { %v294_v17 = vpop.f32.mrf.mxu2 }
  0xa6   : > { %607 = vmatmul.msk.f32.gmra.mxu3 %vm183_vm0, %v294_v17 }
  0xa7   : > { %v219_v18 = vpop.f32.mrf.mxu0 }
  0xa8   : > { %598 = vmatmul.msk.f32.gmra.mxu1 %vm183_vm0, %v219_v18 }
  0xad   : > { %v297_v19 = vpop.f32.mrf.mxu2 }
  0xae   : > { %608 = vmatmul.msk.f32.gmra.mxu3 %vm183_vm0, %v297_v19 }
  0xaf   : > { %v222_v20 = vpop.f32.mrf.mxu0 }
  0xb0   : > { %599 = vmatmul.msk.f32.gmra.mxu1 %vm183_vm0, %v222_v20 }
  0xb5   : > { %v300_v21 = vpop.f32.mrf.mxu2 }
  0xb6   : > { %609 = vmatmul.msk.f32.gmra.mxu3 %vm183_vm0, %v300_v21 }
  0xb7   : > { %v369_v22 = vpop.f32.mrf.mxu0 }
  0xb8   : > { %620 = vmatmul.msk.f32.vlgmr.msrb.gmra.mxu1 %vm183_vm0, %v369_v22 }
  0xbd   : > { %v447_v23 = vpop.f32.mrf.mxu2 }
  0xbe   : > { %634 = vmatmul.msk.f32.vlgmr.msrb.gmra.mxu3 %vm183_vm0, %v447_v23 }
  0xbf   : > { %v372_v24 = vpop.f32.mrf.mxu0 }
  0xc0   : > { %621 = vmatmul.msk.f32.gmra.mxu1 %vm183_vm0, %v372_v24 }
  0xc5   : > { %v450_v25 = vpop.f32.mrf.mxu2 }
  0xc6   : > { %635 = vmatmul.msk.f32.gmra.mxu3 %vm183_vm0, %v450_v25 }
  0xc7   : > { %v375_v26 = vpop.f32.mrf.mxu0 }
  0xc8   : > { %622 = vmatmul.msk.f32.gmra.mxu1 %vm183_vm0, %v375_v26 }
  0xcd   : > { %v453_v27 = vpop.f32.mrf.mxu2 }
  0xce   : > { %636 = vmatmul.msk.f32.gmra.mxu3 %vm183_vm0, %v453_v27 }
  0xcf   : > { %v378_v28 = vpop.f32.mrf.mxu0 }
  0xd0   : > { %623 = vmatmul.msk.f32.gmra.mxu1 %vm183_vm0, %v378_v28 }
  0xd5   : > { %v456_v29 = vpop.f32.mrf.mxu2 }
  0xd6   : > { %637 = vmatmul.msk.f32.gmra.mxu3 %vm183_vm0, %v456_v29 }
 0x115   : > { %v254_v30 = vpop.f32.mrf.mxu1 }
 0x116   : > { %267 = vst.msk [vmem:[%s883_s25] sm:$0xff] %vm266_vm1, %v254_v30 }
 0x11d   : > { %v257_v31 = vpop.f32.mrf.mxu1 }
 0x11e   : > { %268 = vst.msk [vmem:[%s883_s25 + $0x8] sm:$0xff] %vm266_vm1, %v257_v31 }
 0x121   : > { %v332_v32 = vpop.f32.mrf.mxu3 }
 0x122   : > { %610 = vst.msk [vmem:[%s883_s25 + $0x20] sm:$0xff] %vm266_vm1, %v332_v32 }
 0x125   : > { %v260_v33 = vpop.f32.mrf.mxu1 }
 0x126   : > { %269 = vst.msk [vmem:[%s883_s25 + $0x10] sm:$0xff] %vm266_vm1, %v260_v33 }
 0x129   : > { %v335_v34 = vpop.f32.mrf.mxu3 }
 0x12a   : > { %611 = vst.msk [vmem:[%s883_s25 + $0x28] sm:$0xff] %vm266_vm1, %v335_v34 }
 0x12d   : > { %v263_v35 = vpop.f32.mrf.mxu1 }
 0x12e   : > { %270 = vst.msk [vmem:[%s883_s25 + $0x18] sm:$0xff] %vm266_vm1, %v263_v35 }
 0x131   : > { %v338_v36 = vpop.f32.mrf.mxu3 }
 0x132   : > { %612 = vst.msk [vmem:[%s883_s25 + $0x30] sm:$0xff] %vm266_vm1, %v338_v36 }
 0x135   : > { %v410_v37 = vpop.f32.mrf.mxu1 }
 0x136   : > { %624 = vst.msk [vmem:[%s883_s25 + $0x40] sm:$0xff] %vm266_vm1, %v410_v37 }
 0x139   : > { %v341_v38 = vpop.f32.mrf.mxu3 }
 0x13a   : > { %613 = vst.msk [vmem:[%s883_s25 + $0x38] sm:$0xff] %vm266_vm1, %v341_v38 }
 0x13d   : > { %v413_v39 = vpop.f32.mrf.mxu1 }
 0x13e   : > { %625 = vst.msk [vmem:[%s883_s25 + $0x48] sm:$0xff] %vm266_vm1, %v413_v39 }
 0x141   : > { %v488_v40 = vpop.f32.mrf.mxu3 }
 0x142   : > { %638 = vst.msk [vmem:[%s883_s25 + $0x60] sm:$0xff] %vm266_vm1, %v488_v40 }
 0x145   : > { %v416_v41 = vpop.f32.mrf.mxu1 }
 0x146   : > { %626 = vst.msk [vmem:[%s883_s25 + $0x50] sm:$0xff] %vm266_vm1, %v416_v41 }
 0x149   : > { %v491_v42 = vpop.f32.mrf.mxu3 }
 0x14a   : > { %639 = vst.msk [vmem:[%s883_s25 + $0x68] sm:$0xff] %vm266_vm1, %v491_v42 }
 0x14d   : > { %v419_v43 = vpop.f32.mrf.mxu1 }
 0x14e   : > { %627 = vst.msk [vmem:[%s883_s25 + $0x58] sm:$0xff] %vm266_vm1, %v419_v43 }
 0x151   : > { %v494_v44 = vpop.f32.mrf.mxu3 }
 0x152   : > { %640 = vst.msk [vmem:[%s883_s25 + $0x70] sm:$0xff] %vm266_vm1, %v494_v44 }
 0x159   : > { %v497_v45 = vpop.f32.mrf.mxu3 }
 0x15a   : > { %641 = vst.msk [vmem:[%s883_s25 + $0x78] sm:$0xff] %vm266_vm1, %v497_v45 }
 0x15b   : > { %719 = shalt.err (!%p716_p3)
}
 0x15c   : > { %s756_s17 = smov 128   ;;  %s757_s19 = smov 8  }
 0x15d   : > { %651 = dma.vmem_to_hbm [thread:$0]  (%p816_p5), %s520_s30, 2048, %s522_s4, %s506_s5, %s756_s17, %s756_s17, %s757_s19  }
 0x15e PF: > { %p657_p4 = scmp.ge.s32.totalorder %s754_s15, 2  ;;  %s536_s20 = sand.u32 1, %s742_s12  }
 0x15f   : > { %s537_s24 = scalar_lea.sflag [#allocation3], %s536_s20 }
 0x160   : > { %p654_p7 = pnand %p657_p4, %p820_p6 }
 0x162   : > { %p655_p8 = pneg %p654_p7 }
 0x164   : > { %737 = dma.done.wait (%p655_p8), %s537_s24, 2048  }
 0x165   : > { %739 = vsyncadd (%p655_p8), %s537_s24, 4294965248  ;;  %p13_p9 = scmp.ge.s32.totalorder %s803_s18, 4   ;;  %s957_s12 = smov %s746_s13 }
 0x166   : > { %s958_s13 = smov %s750_s14  ;;  %s959_s14 = smov %s814_s21 }
 0x167   : > { %s960_s15 = smov %s803_s18  ;;  %15 = sbr.rel (!%p13_p9) target bundleno = 3 (0x3), region = 73 }
 0x16c   :  { %543 = vsyncpa [#allocation3], 1 }
 0x16d   :  { %545 = vsyncpa [#allocation3 + $0x1], 1 }

</bundles_post_ra>
